<compile_context>
chip_gen: v7x
topology: tpu7x:2x2x1
jax: 0.10.0
libtpu: 0.0.40
codegen_flags: <defaults>
</compile_context>

<pallas_src>
import functools
import math

import jax
import jax.numpy as jnp
from jax import lax
from jax.experimental import pallas as pl
from jax.experimental.pallas import tpu as pltpu


def _ceil_div(a, b):
    return -(-a // b)


def _pow(x, g):
    # gamma is a static Python float (default 2.0): use repeated multiply for
    # small integer exponents, generic power otherwise.
    if float(g) == int(g) and 1 <= int(g) <= 4:
        r = x
        for _ in range(int(g) - 1):
            r = r * x
        return r
    return jnp.power(x, g)


def _seg_stats_kernel(
    logits_ref,      # (1, C, TN) f32
    tgt_ref,         # (1, 1, TN) i32
    out_ref,         # (1, C, 8)  f32  (per-batch stats block)
    acc_inter,       # VMEM (C, 1) f32
    acc_pred,        # VMEM (C, 1) f32
    acc_tgt,         # VMEM (C, 1) f32
    acc_focal,       # VMEM (1, 1) f32
    acc_valid,       # VMEM (1, 1) f32
    *,
    hw_real,
    gamma,
    ignore_index,
):
    p_idx = pl.program_id(1)
    n_p = pl.num_programs(1)

    logits = logits_ref[0]                                   # (C, TN) f32
    tgt = tgt_ref[0]                                         # (1, TN) i32
    C, TN = logits.shape

    # Mask for padded pixel columns (H*W was padded up to a multiple of TN).
    lane = lax.broadcasted_iota(jnp.int32, (1, TN), 1) + p_idx * TN
    pix = (lane < hw_real).astype(jnp.float32)               # (1, TN)

    # Numerically-stable softmax over the class (sublane) axis; padded pixel
    # columns get exactly zero probability so they never reach the sums.
    m = jnp.max(logits, axis=0, keepdims=True)                # (1, TN)
    e = jnp.exp(logits - m)                                   # (C, TN)
    s = jnp.sum(e, axis=0, keepdims=True)                     # (1, TN)
    p = e * (pix / s)                                         # (C, TN)

    cls = lax.broadcasted_iota(jnp.int32, (C, TN), 0)
    onehot = (tgt == cls).astype(jnp.float32)                 # (C, TN); 0 for ignore/pad
    prod = p * onehot                                         # (C, TN)

    # SoftJaccard statistics for this tile (lane-axis reductions -> (C, 1)).
    inter_t = jnp.sum(prod, axis=1, keepdims=True)
    pred_t = jnp.sum(p, axis=1, keepdims=True)
    tgt_t = jnp.sum(onehot, axis=1, keepdims=True)

    # Cross-entropy + focal weighting (ignored / padded pixels -> 0).
    valid = (tgt != ignore_index).astype(jnp.float32) * pix   # (1, TN)
    lse = m + jnp.log(s)                                      # (1, TN)
    logit_t = jnp.sum(logits * onehot, axis=0, keepdims=True) # (1, TN)
    ce = (lse - logit_t) * valid                              # (1, TN)
    # p_t == exp(-ce) mathematically; reuse prod instead of a second exp (EUP).
    p_t = jnp.sum(prod, axis=0, keepdims=True)                # (1, TN)
    focal = _pow(1.0 - p_t, gamma) * ce                       # (1, TN)
    focal_t = jnp.sum(focal, axis=1, keepdims=True)           # (1, 1)
    valid_t = jnp.sum(valid, axis=1, keepdims=True)           # (1, 1)

    @pl.when(p_idx == 0)
    def _():
        acc_inter[...] = jnp.zeros_like(acc_inter)
        acc_pred[...] = jnp.zeros_like(acc_pred)
        acc_tgt[...] = jnp.zeros_like(acc_tgt)
        acc_focal[...] = jnp.zeros_like(acc_focal)
        acc_valid[...] = jnp.zeros_like(acc_valid)

    acc_inter[...] += inter_t
    acc_pred[...] += pred_t
    acc_tgt[...] += tgt_t
    acc_focal[...] += focal_t
    acc_valid[...] += valid_t

    # Finalize: write the tiny per-batch stats block once per batch element.
    @pl.when(p_idx == n_p - 1)
    def _():
        stats = jnp.concatenate(
            [
                acc_inter[...],                                 # lane 0: intersection
                acc_pred[...],                                  # lane 1: softmax sum
                acc_tgt[...],                                   # lane 2: one-hot sum
                jnp.broadcast_to(acc_focal[...], (C, 1)),       # lane 3: focal sum
                jnp.broadcast_to(acc_valid[...], (C, 1)),       # lane 4: valid count
                jnp.zeros((C, 3), jnp.float32),
            ],
            axis=1,
        )                                                       # (C, 8)
        out_ref[0] = stats


def semantic_segmentation_loss(
    pred_logits,
    target,
    num_classes,
    jaccard_alpha=0.9,
    gamma=2.0,
    ignore_index=-1,
    eps=1e-5,
    tile_n=8192,
):
    B, C, H, W = pred_logits.shape
    assert C == num_classes
    HW = H * W

    # NCHW -> (B, C, H*W): pure reshape (no transpose / no lane padding in HBM).
    x = pred_logits.reshape(B, C, HW).astype(jnp.float32)
    t = target.reshape(B, 1, HW).astype(jnp.int32)

    # Pixel-tile size: multiple of 128 lanes, capped by (rounded-up) H*W.
    tile_n = max(128, (tile_n // 128) * 128)
    hw128 = _ceil_div(HW, 128) * 128
    TN = min(tile_n, hw128)
    hw_pad = _ceil_div(HW, TN) * TN
    if hw_pad != HW:
        x = jnp.pad(x, ((0, 0), (0, 0), (0, hw_pad - HW)))
        t = jnp.pad(t, ((0, 0), (0, 0), (0, hw_pad - HW)),
                    constant_values=ignore_index)
    P = hw_pad // TN

    kernel = functools.partial(
        _seg_stats_kernel, hw_real=HW, gamma=gamma, ignore_index=ignore_index
    )

    cost = pl.CostEstimate(
        flops=int(12 * B * hw_pad * C),
        transcendentals=int(B * hw_pad * (C + 2)),
        bytes_accessed=int(x.size * 4 + t.size * 4 + B * C * 8 * 4),
    )

    # NOTE: for B == 1 the v7x megacore split (parallel batch axis) degenerates
    # to a single core; splitting the pixel axis per-core would be the next step.
    stats = pl.pallas_call(
        kernel,
        out_shape=jax.ShapeDtypeStruct((B, C, 8), jnp.float32),
        grid_spec=pltpu.PrefetchScalarGridSpec(
            num_scalar_prefetch=0,
            grid=(B, P),
            in_specs=[
                pl.BlockSpec((1, C, TN), lambda b, p: (b, 0, p)),
                pl.BlockSpec((1, 1, TN), lambda b, p: (b, 0, p)),
            ],
            out_specs=pl.BlockSpec((1, C, 8), lambda b, p: (b, 0, 0)),
            scratch_shapes=[
                pltpu.VMEM((C, 1), jnp.float32),   # intersection accumulator
                pltpu.VMEM((C, 1), jnp.float32),   # pred-sum accumulator
                pltpu.VMEM((C, 1), jnp.float32),   # target-sum accumulator
                pltpu.VMEM((1, 1), jnp.float32),   # focal-sum accumulator
                pltpu.VMEM((1, 1), jnp.float32),   # valid-count accumulator
            ],
        ),
        compiler_params=pltpu.CompilerParams(
            dimension_semantics=("parallel", "arbitrary"),
        ),
        cost_estimate=cost,
    )(x, t)

    tot = jnp.sum(stats, axis=0)                   # (C, 8): combine per-batch partials
    inter = tot[:, 0]
    pred_sum = tot[:, 1]
    tgt_sum = tot[:, 2]
    focal_sum = tot[0, 3]
    valid_cnt = tot[0, 4]

    iou = (inter + eps) / (pred_sum + tgt_sum - inter + eps)
    jaccard_loss = -jnp.sum(jnp.log(iou)) / num_classes
    focal_loss = focal_sum / valid_cnt
    return jaccard_alpha * jaccard_loss + focal_loss


def reference_loss(pred_logits, target, num_classes, jaccard_alpha=0.9, gamma=2.0,
                   ignore_index=-1, eps=1e-5):
    # Pure-JAX reference mirroring the PyTorch module.
    logp = jax.nn.log_softmax(pred_logits.astype(jnp.float32), axis=1)
    p = jnp.exp(logp)
    loss_j = 0.0
    for c in range(num_classes):
        tmask = (target == c).astype(jnp.float32)
        pc = p[:, c]
        inter = jnp.sum(pc * tmask)
        iou = (inter + eps) / (jnp.sum(pc) + jnp.sum(tmask) - inter + eps)
        loss_j = loss_j - jnp.log(iou)
    loss_j = loss_j / num_classes
    valid = target != ignore_index
    tgt_c = jnp.where(valid, target, 0)
    ce = -jnp.take_along_axis(logp, tgt_c[:, None], axis=1)[:, 0]
    ce = jnp.where(valid, ce, 0.0)
    focal = ((1.0 - jnp.exp(-ce)) ** gamma) * ce
    focal_loss = jnp.sum(jnp.where(valid, focal, 0.0)) / jnp.sum(valid)
    return jaccard_alpha * loss_j + focal_loss


if __name__ == "__main__":
    B, C, H, W = 2, 4, 16, 16
    key = jax.random.PRNGKey(0)
    k1, k2 = jax.random.split(key)
    pred_logits = jax.random.normal(k1, (B, C, H, W), dtype=jnp.float32)
    # labels in [-1, num_classes); -1 pixels are ignored by the focal loss
    target = jax.random.randint(k2, (B, H, W), -1, C, dtype=jnp.int32)

    loss = semantic_segmentation_loss(pred_logits, target, num_classes=C)
    loss = jax.block_until_ready(loss)

    ref = reference_loss(pred_logits, target, num_classes=C)
    assert jnp.isfinite(loss), "loss is not finite"
    assert jnp.allclose(loss, ref, rtol=1e-3, atol=1e-5), (loss, ref)

    print("KERNEL_OK")
</pallas_src>

<mosaic_0001>
module attributes {stable_mosaic.version = 11 : i64} {
  func.func @_seg_stats_kernel(%arg0: i32, %arg1: i32, %arg2: memref<1x4x256xf32, #tpu.memory_space<vmem>>, %arg3: memref<1x1x256xi32, #tpu.memory_space<vmem>>, %arg4: memref<1x4x8xf32, #tpu.memory_space<vmem>>, %arg5: memref<4x1xf32, #tpu.memory_space<vmem>>, %arg6: memref<4x1xf32, #tpu.memory_space<vmem>>, %arg7: memref<4x1xf32, #tpu.memory_space<vmem>>, %arg8: memref<1x1xf32, #tpu.memory_space<vmem>>, %arg9: memref<1x1xf32, #tpu.memory_space<vmem>>) attributes {dimension_semantics = [#tpu.dimension_semantics<parallel>, #tpu.dimension_semantics<arbitrary>], iteration_bounds = array<i64: 2, 1>, scalar_prefetch = 0 : i64, scratch_operands = 5 : i64, tpu.core_type = #tpu.core_type<tc>, window_params = [{transform_indices = @transform_0, window_bounds = array<i64: 1, 4, 256>}, {transform_indices = @transform_1, window_bounds = array<i64: 1, 1, 256>}, {transform_indices = @transform_2, window_bounds = array<i64: 1, 4, 8>}]} {
    %c0 = arith.constant 0 : index
    %c0_0 = arith.constant 0 : index
    %c0_1 = arith.constant 0 : index
    %0 = vector.load %arg2[%c0, %c0_0, %c0_1] : memref<1x4x256xf32, #tpu.memory_space<vmem>>, vector<1x4x256xf32>
    %1 = vector.shape_cast %0 : vector<1x4x256xf32> to vector<4x256xf32>
    %c0_2 = arith.constant 0 : index
    %c0_3 = arith.constant 0 : index
    %c0_4 = arith.constant 0 : index
    %2 = vector.load %arg3[%c0_2, %c0_3, %c0_4] : memref<1x1x256xi32, #tpu.memory_space<vmem>>, vector<1x1x256xi32>
    %3 = vector.shape_cast %2 : vector<1x1x256xi32> to vector<1x256xi32>
    %4 = tpu.iota {dimensions = array<i32: 1>} : vector<1x256xi32>
    %c256_i32 = arith.constant 256 : i32
    %5 = arith.muli %arg1, %c256_i32 : i32
    %6 = vector.broadcast %5 : i32 to vector<1x256xi32>
    %7 = arith.addi %4, %6 : vector<1x256xi32>
    %c256_i32_5 = arith.constant 256 : i32
    %8 = vector.broadcast %c256_i32_5 : i32 to vector<1x256xi32>
    %9 = arith.cmpi slt, %7, %8 : vector<1x256xi32>
    %10 = arith.extui %9 : vector<1x256xi1> to vector<1x256xi32>
    %11 = arith.sitofp %10 : vector<1x256xi32> to vector<1x256xf32>
    %cst = arith.constant dense<0xFF800000> : vector<256xf32>
    %12 = vector.multi_reduction <maximumf>, %1, %cst [0] : vector<4x256xf32> to vector<256xf32>
    %13 = vector.shape_cast %12 : vector<256xf32> to vector<1x256xf32>
    %14 = vector.broadcast %13 : vector<1x256xf32> to vector<4x256xf32>
    %15 = arith.subf %1, %14 : vector<4x256xf32>
    %16 = math.exp %15 : vector<4x256xf32>
    %cst_6 = arith.constant dense<0.000000e+00> : vector<256xf32>
    %17 = vector.multi_reduction <add>, %16, %cst_6 [0] : vector<4x256xf32> to vector<256xf32>
    %18 = vector.shape_cast %17 : vector<256xf32> to vector<1x256xf32>
    %19 = arith.divf %11, %18 : vector<1x256xf32>
    %20 = vector.broadcast %19 : vector<1x256xf32> to vector<4x256xf32>
    %21 = arith.mulf %16, %20 : vector<4x256xf32>
    %22 = tpu.iota {dimensions = array<i32: 0>} : vector<4x256xi32>
    %23 = vector.broadcast %3 : vector<1x256xi32> to vector<4x256xi32>
    %24 = arith.cmpi eq, %23, %22 : vector<4x256xi32>
    %25 = arith.extui %24 : vector<4x256xi1> to vector<4x256xi32>
    %26 = arith.sitofp %25 : vector<4x256xi32> to vector<4x256xf32>
    %27 = arith.mulf %21, %26 : vector<4x256xf32>
    %cst_7 = arith.constant dense<0.000000e+00> : vector<4xf32>
    %28 = vector.multi_reduction <add>, %27, %cst_7 [1] : vector<4x256xf32> to vector<4xf32>
    %29 = vector.shape_cast %28 : vector<4xf32> to vector<4x1xf32>
    %cst_8 = arith.constant dense<0.000000e+00> : vector<4xf32>
    %30 = vector.multi_reduction <add>, %21, %cst_8 [1] : vector<4x256xf32> to vector<4xf32>
    %31 = vector.shape_cast %30 : vector<4xf32> to vector<4x1xf32>
    %cst_9 = arith.constant dense<0.000000e+00> : vector<4xf32>
    %32 = vector.multi_reduction <add>, %26, %cst_9 [1] : vector<4x256xf32> to vector<4xf32>
    %33 = vector.shape_cast %32 : vector<4xf32> to vector<4x1xf32>
    %c-1_i32 = arith.constant -1 : i32
    %34 = vector.broadcast %c-1_i32 : i32 to vector<1x256xi32>
    %35 = arith.cmpi ne, %3, %34 : vector<1x256xi32>
    %36 = arith.extui %35 : vector<1x256xi1> to vector<1x256xi32>
    %37 = arith.sitofp %36 : vector<1x256xi32> to vector<1x256xf32>
    %38 = arith.mulf %37, %11 : vector<1x256xf32>
    %39 = math.log %18 : vector<1x256xf32>
    %40 = arith.addf %13, %39 : vector<1x256xf32>
    %41 = arith.mulf %1, %26 : vector<4x256xf32>
    %cst_10 = arith.constant dense<0.000000e+00> : vector<256xf32>
    %42 = vector.multi_reduction <add>, %41, %cst_10 [0] : vector<4x256xf32> to vector<256xf32>
    %43 = vector.shape_cast %42 : vector<256xf32> to vector<1x256xf32>
    %44 = arith.subf %40, %43 : vector<1x256xf32>
    %45 = arith.mulf %44, %38 : vector<1x256xf32>
    %cst_11 = arith.constant dense<0.000000e+00> : vector<256xf32>
    %46 = vector.multi_reduction <add>, %27, %cst_11 [0] : vector<4x256xf32> to vector<256xf32>
    %47 = vector.shape_cast %46 : vector<256xf32> to vector<1x256xf32>
    %cst_12 = arith.constant 1.000000e+00 : f32
    %48 = vector.broadcast %cst_12 : f32 to vector<1x256xf32>
    %49 = arith.subf %48, %47 : vector<1x256xf32>
    %50 = arith.mulf %49, %49 : vector<1x256xf32>
    %51 = arith.mulf %50, %45 : vector<1x256xf32>
    %cst_13 = arith.constant dense<0.000000e+00> : vector<1xf32>
    %52 = vector.multi_reduction <add>, %51, %cst_13 [1] : vector<1x256xf32> to vector<1xf32>
    %53 = vector.shape_cast %52 : vector<1xf32> to vector<1x1xf32>
    %cst_14 = arith.constant dense<0.000000e+00> : vector<1xf32>
    %54 = vector.multi_reduction <add>, %38, %cst_14 [1] : vector<1x256xf32> to vector<1xf32>
    %55 = vector.shape_cast %54 : vector<1xf32> to vector<1x1xf32>
    %c0_i32 = arith.constant 0 : i32
    %56 = arith.cmpi eq, %arg1, %c0_i32 : i32
    %57 = arith.extui %56 : i1 to i32
    %c0_i32_15 = arith.constant 0 : i32
    %58 = arith.cmpi ne, %57, %c0_i32_15 : i32
    scf.if %58 {
      %cst_38 = arith.constant 0.000000e+00 : f32
      %77 = vector.broadcast %cst_38 : f32 to vector<4x1xf32>
      %c0_39 = arith.constant 0 : index
      %c0_40 = arith.constant 0 : index
      %78 = vector.load %arg5[%c0_39, %c0_40] : memref<4x1xf32, #tpu.memory_space<vmem>>, vector<4x1xf32>
      tpu.vector_store %arg5[%c0_39, %c0_40], %77 {strides = array<i32>} : memref<4x1xf32, #tpu.memory_space<vmem>>, vector<4x1xf32>,
      %cst_41 = arith.constant 0.000000e+00 : f32
      %79 = vector.broadcast %cst_41 : f32 to vector<4x1xf32>
      %c0_42 = arith.constant 0 : index
      %c0_43 = arith.constant 0 : index
      %80 = vector.load %arg6[%c0_42, %c0_43] : memref<4x1xf32, #tpu.memory_space<vmem>>, vector<4x1xf32>
      tpu.vector_store %arg6[%c0_42, %c0_43], %79 {strides = array<i32>} : memref<4x1xf32, #tpu.memory_space<vmem>>, vector<4x1xf32>,
      %cst_44 = arith.constant 0.000000e+00 : f32
      %81 = vector.broadcast %cst_44 : f32 to vector<4x1xf32>
      %c0_45 = arith.constant 0 : index
      %c0_46 = arith.constant 0 : index
      %82 = vector.load %arg7[%c0_45, %c0_46] : memref<4x1xf32, #tpu.memory_space<vmem>>, vector<4x1xf32>
      tpu.vector_store %arg7[%c0_45, %c0_46], %81 {strides = array<i32>} : memref<4x1xf32, #tpu.memory_space<vmem>>, vector<4x1xf32>,
      %cst_47 = arith.constant 0.000000e+00 : f32
      %83 = vector.broadcast %cst_47 : f32 to vector<1x1xf32>
      %c0_48 = arith.constant 0 : index
      %c0_49 = arith.constant 0 : index
      %84 = vector.load %arg8[%c0_48, %c0_49] : memref<1x1xf32, #tpu.memory_space<vmem>>, vector<1x1xf32>
      tpu.vector_store %arg8[%c0_48, %c0_49], %83 {strides = array<i32>} : memref<1x1xf32, #tpu.memory_space<vmem>>, vector<1x1xf32>,
      %cst_50 = arith.constant 0.000000e+00 : f32
      %85 = vector.broadcast %cst_50 : f32 to vector<1x1xf32>
      %c0_51 = arith.constant 0 : index
      %c0_52 = arith.constant 0 : index
      %86 = vector.load %arg9[%c0_51, %c0_52] : memref<1x1xf32, #tpu.memory_space<vmem>>, vector<1x1xf32>
      tpu.vector_store %arg9[%c0_51, %c0_52], %85 {strides = array<i32>} : memref<1x1xf32, #tpu.memory_space<vmem>>, vector<1x1xf32>,
    } else {
    }
    %c0_16 = arith.constant 0 : index
    %c0_17 = arith.constant 0 : index
    %59 = vector.load %arg5[%c0_16, %c0_17] : memref<4x1xf32, #tpu.memory_space<vmem>>, vector<4x1xf32>
    %60 = arith.addf %59, %29 : vector<4x1xf32>
    %c0_18 = arith.constant 0 : index
    %c0_19 = arith.constant 0 : index
    %61 = vector.load %arg5[%c0_18, %c0_19] : memref<4x1xf32, #tpu.memory_space<vmem>>, vector<4x1xf32>
    tpu.vector_store %arg5[%c0_18, %c0_19], %60 {strides = array<i32>} : memref<4x1xf32, #tpu.memory_space<vmem>>, vector<4x1xf32>,
    %c0_20 = arith.constant 0 : index
    %c0_21 = arith.constant 0 : index
    %62 = vector.load %arg6[%c0_20, %c0_21] : memref<4x1xf32, #tpu.memory_space<vmem>>, vector<4x1xf32>
    %63 = arith.addf %62, %31 : vector<4x1xf32>
    %c0_22 = arith.constant 0 : index
    %c0_23 = arith.constant 0 : index
    %64 = vector.load %arg6[%c0_22, %c0_23] : memref<4x1xf32, #tpu.memory_space<vmem>>, vector<4x1xf32>
    tpu.vector_store %arg6[%c0_22, %c0_23], %63 {strides = array<i32>} : memref<4x1xf32, #tpu.memory_space<vmem>>, vector<4x1xf32>,
    %c0_24 = arith.constant 0 : index
    %c0_25 = arith.constant 0 : index
    %65 = vector.load %arg7[%c0_24, %c0_25] : memref<4x1xf32, #tpu.memory_space<vmem>>, vector<4x1xf32>
    %66 = arith.addf %65, %33 : vector<4x1xf32>
    %c0_26 = arith.constant 0 : index
    %c0_27 = arith.constant 0 : index
    %67 = vector.load %arg7[%c0_26, %c0_27] : memref<4x1xf32, #tpu.memory_space<vmem>>, vector<4x1xf32>
    tpu.vector_store %arg7[%c0_26, %c0_27], %66 {strides = array<i32>} : memref<4x1xf32, #tpu.memory_space<vmem>>, vector<4x1xf32>,
    %c0_28 = arith.constant 0 : index
    %c0_29 = arith.constant 0 : index
    %68 = vector.load %arg8[%c0_28, %c0_29] : memref<1x1xf32, #tpu.memory_space<vmem>>, vector<1x1xf32>
    %69 = arith.addf %68, %53 : vector<1x1xf32>
    %c0_30 = arith.constant 0 : index
    %c0_31 = arith.constant 0 : index
    %70 = vector.load %arg8[%c0_30, %c0_31] : memref<1x1xf32, #tpu.memory_space<vmem>>, vector<1x1xf32>
    tpu.vector_store %arg8[%c0_30, %c0_31], %69 {strides = array<i32>} : memref<1x1xf32, #tpu.memory_space<vmem>>, vector<1x1xf32>,
    %c0_32 = arith.constant 0 : index
    %c0_33 = arith.constant 0 : index
    %71 = vector.load %arg9[%c0_32, %c0_33] : memref<1x1xf32, #tpu.memory_space<vmem>>, vector<1x1xf32>
    %72 = arith.addf %71, %55 : vector<1x1xf32>
    %c0_34 = arith.constant 0 : index
    %c0_35 = arith.constant 0 : index
    %73 = vector.load %arg9[%c0_34, %c0_35] : memref<1x1xf32, #tpu.memory_space<vmem>>, vector<1x1xf32>
    tpu.vector_store %arg9[%c0_34, %c0_35], %72 {strides = array<i32>} : memref<1x1xf32, #tpu.memory_space<vmem>>, vector<1x1xf32>,
    %c0_i32_36 = arith.constant 0 : i32
    %74 = arith.cmpi eq, %arg1, %c0_i32_36 : i32
    %75 = arith.extui %74 : i1 to i32
    %c0_i32_37 = arith.constant 0 : i32
    %76 = arith.cmpi ne, %75, %c0_i32_37 : i32
    scf.if %76 {
      %c0_38 = arith.constant 0 : index
      %c0_39 = arith.constant 0 : index
      %77 = vector.load %arg5[%c0_38, %c0_39] : memref<4x1xf32, #tpu.memory_space<vmem>>, vector<4x1xf32>
      %c0_40 = arith.constant 0 : index
      %c0_41 = arith.constant 0 : index
      %78 = vector.load %arg6[%c0_40, %c0_41] : memref<4x1xf32, #tpu.memory_space<vmem>>, vector<4x1xf32>
      %c0_42 = arith.constant 0 : index
      %c0_43 = arith.constant 0 : index
      %79 = vector.load %arg7[%c0_42, %c0_43] : memref<4x1xf32, #tpu.memory_space<vmem>>, vector<4x1xf32>
      %c0_44 = arith.constant 0 : index
      %c0_45 = arith.constant 0 : index
      %80 = vector.load %arg8[%c0_44, %c0_45] : memref<1x1xf32, #tpu.memory_space<vmem>>, vector<1x1xf32>
      %81 = vector.shape_cast %80 : vector<1x1xf32> to vector<1x1xf32>
      %82 = vector.broadcast %81 : vector<1x1xf32> to vector<4x1xf32>
      %c0_46 = arith.constant 0 : index
      %c0_47 = arith.constant 0 : index
      %83 = vector.load %arg9[%c0_46, %c0_47] : memref<1x1xf32, #tpu.memory_space<vmem>>, vector<1x1xf32>
      %84 = vector.shape_cast %83 : vector<1x1xf32> to vector<1x1xf32>
      %85 = vector.broadcast %84 : vector<1x1xf32> to vector<4x1xf32>
      %cst_48 = arith.constant 0.000000e+00 : f32
      %86 = vector.broadcast %cst_48 : f32 to vector<4x3xf32>
      %87 = tpu.concatenate %77, %78, %79, %82, %85, %86 in 1 : vector<4x1xf32>, vector<4x1xf32>, vector<4x1xf32>, vector<4x1xf32>, vector<4x1xf32>, vector<4x3xf32> -> vector<4x8xf32>
      %c0_49 = arith.constant 0 : index
      %c0_50 = arith.constant 0 : index
      %c0_51 = arith.constant 0 : index
      %88 = vector.load %arg4[%c0_49, %c0_50, %c0_51] : memref<1x4x8xf32, #tpu.memory_space<vmem>>, vector<1x4x8xf32>
      %89 = vector.shape_cast %88 : vector<1x4x8xf32> to vector<4x8xf32>
      %90 = vector.shape_cast %87 : vector<4x8xf32> to vector<1x4x8xf32>
      tpu.vector_store %arg4[%c0_49, %c0_50, %c0_51], %90 {strides = array<i32>} : memref<1x4x8xf32, #tpu.memory_space<vmem>>, vector<1x4x8xf32>,
    } else {
    }
    return
  }
  func.func @transform_0(%arg0: i32, %arg1: i32) -> (i32, i32, i32) {
    %c0_i32 = arith.constant 0 : i32
    %c0_i32_0 = arith.constant 0 : i32
    return %arg0, %c0_i32, %arg1 : i32, i32, i32
  }
  func.func @transform_1(%arg0: i32, %arg1: i32) -> (i32, i32, i32) {
    %c0_i32 = arith.constant 0 : i32
    %c0_i32_0 = arith.constant 0 : i32
    return %arg0, %c0_i32, %arg1 : i32, i32, i32
  }
  func.func @transform_2(%arg0: i32, %arg1: i32) -> (i32, i32, i32) {
    %c0_i32 = arith.constant 0 : i32
    %c0_i32_0 = arith.constant 0 : i32
    %c0_i32_1 = arith.constant 0 : i32
    return %arg0, %c0_i32, %c0_i32_0 : i32, i32, i32
  }
}

</mosaic_0001>

<bundles_post_ra>
// kernel: tpu_custom_call.1
= control target key start
LH: loop header
LB: loop body
LE: loop exit
PB: predicated region body
PF: predicated region fallthrough
CT: control target
= control target key end

     0   :  { %7 = vsyncpa [#allocation8], 0  ;;  %s1166_s0 = inlined_call_operand.hbm [shape: f32[2,4,256], index: 0, kind: input, shape index: {}]   ;;  %s1167_s1 = inlined_call_operand.hbm [shape: s32[2,1,256], index: 1, kind: input, shape index: {}]   ;;  %s1168_s2 = inlined_call_operand.hbm [shape: f32[2,4,8], index: 2, kind: output, shape index: {}]  }
   0x1   :  { %9 = vsyncpa [#allocation8 + $0x1], 0 }
   0x2   :  { %10 = vsyncpa [#allocation11], 0 }
   0x3   :  { %12 = vsyncpa [#allocation11 + $0x1], 0 }
   0x4   :  { %13 = vsyncpa [#allocation9], 0 }
   0x5   :  { %15 = vsyncpa [#allocation9 + $0x1], 0  ;;  %s894_s9 = smov 0   ;;  %s896_s10 = smov 0  }
   0x6   :  { %s898_s11 = smov 0   ;;  %s900_s12 = smov 0  }
   0x7   :  { %s902_s13 = smov 0   ;;  %s904_s14 = smov 0  }
   0x8 LB: > { %s611_s15 = sadd.s32 4294967295, %s867_s14   ;;  %s612_s16 = sadd.s32 4294967294, %s867_s14   ;;  %s867_s14 = sphi %s904_s14, %s21_s14   ;;  %s863_s13 = sphi %s902_s13, %s1188_s13   ;;  %s859_s12 = sphi %s900_s12, %s1187_s12   ;;  %s855_s11 = sphi %s898_s11, %s1186_s11   ;;  %s851_s10 = sphi %s896_s10, %s1185_s10   ;;  %s847_s9 = sphi %s894_s9, %s1184_s9  }
   0x9   : > { %s33_s17 = sadd.s32 1, %s863_s13  ;;  %s42_s18 = sadd.s32 1, %s855_s11 }
   0xa   : > { %p35_p0 = scmp.ge.s32.totalorder %s33_s17, 2  ;;  %p49_p1 = scmp.ne.s32.totalorder %s855_s11, %s851_s10 }
   0xb   : > { %p50_p2 = scmp.eq.s32.totalorder %s867_s14, 0  ;;  %p55_p3 = scmp.ne.s32.totalorder %s851_s10, %s847_s9 }
   0xc   : > { %s1190_s17 = smov (%p35_p0, %s33_s17), 0  ;;  %p56_p5 = scmp.eq.s32.totalorder %s611_s15, 0 }
   0xd   : > { %p935_p4 = por %p50_p2, %p49_p1  ;;  %s37_s20 = ssub.s32 %s863_s13, %s1190_s17 }
   0xe   : > { %p107_p6 = scmp.eq.s32.totalorder %s611_s15, 1  ;;  %p40_p7 = scmp.eq.s32.totalorder %s37_s20, 0 }
   0xf   : > { %p941_p8 = por %p56_p5, %p55_p3  ;;  %p113_p10 = scmp.eq.s32.totalorder %s612_s16, 1 }
  0x10   : > { %p945_p9 = por %p107_p6, %p49_p1  ;;  %p653_p13 = scmp.lt.s32.totalorder %s867_s14, 2 }
  0x11   : > { %s1172_s21 = scalar_select %p941_p8, 1, 0 }
  0x12   : > { %s1173_s22 = scalar_select %p945_p9, 1, 0 }
  0x13   : > { %s950_s23 = scalar_select %p40_p7, %s855_s11, %s42_s18  }
  0x14   : > { %p952_p11 = por %p113_p10, %p55_p3  ;;  %s959_s25 = sand.u32 1, %s855_s11  }
  0x15   : > { %s615_s26 = sshll.u32 %s959_s25, 3  ;;  %s634_s27 = sshll.u32 %s863_s13, 7 }
  0x16   : > { %s1174_s24 = scalar_select %p952_p11, 1, 0 }
  0x17   : > { %s966_s30 = scalar_lea.hbm %s1166_s0, %s634_s27  ;;  %s137_s3 = scalar_lea.vmem [#allocation7], %s615_s26 }
  0x18   : > { %s147_s4 = sshll.u32 %s137_s3, 4  ;;  %p972_p0 = pnand %p653_p13, %p935_p4  ;;  %s968_s4 = int_to_ptr.vmem [resolvable:$true] %s147_s4 }
  0x19   : > { %s134_s6 = scalar_lea.sflag [#allocation8], %s959_s25  ;;  %s721_s7 = scalar_lea.hbm %s966_s30, 128 }
  0x1a   : > { %p722_p3 = scmp.ne.s32.totalorder %s966_s30, %s721_s7  ;;  %p723_p5 = pneg %p972_p0 }
  0x1b   : > { %s726_s16 = scalar_lea.hbm %s1166_s0, 256  ;;  %p727_p4 = scmp.lt.u32.totalorder %s966_s30, %s1166_s0 }
  0x1c   : > { %p724_p6 = pnand %p723_p5, %p722_p3  ;;  %p728_p10 = scmp.lt.u32.totalorder %s726_s16, %s721_s7 }
  0x1d   : > { %p730_p12 = scmp.lt.u32.totalorder %s721_s7, %s966_s30 }
  0x1e   : > { %p725_p7 = pneg %p724_p6  ;;  %p729_p13 = por %p728_p10, %p727_p4 }
  0x20   : > { %p731_p1 = por %p730_p12, %p729_p13 }
  0x22   : > { %p732_p2 = pnand %p731_p1, %p725_p7 }
  0x24   : > { %735 = shalt.err (!%p732_p2)
}
  0x25   : > { %s736_s20 = scalar_lea.vmem %s968_s4, 128  ;;  %s869_s26 = smov [#allocation7]  }
  0x26   : > { %p737_p3 = scmp.ne.s32.totalorder %s968_s4, %s736_s20  ;;  %s741_s27 = sshll.u32 %s869_s26, 4  ;;  %s742_s27 = int_to_ptr.vmem [resolvable:$false] %s741_s27 }
  0x27   : > { %s743_s28 = scalar_lea.vmem %s742_s27, 256  ;;  %p744_p9 = scmp.lt.s32.totalorder %s968_s4, %s742_s27 }
  0x28   : > { %p739_p6 = pnand %p737_p3, %p723_p5  ;;  %p745_p4 = scmp.lt.s32.totalorder %s743_s28, %s736_s20 }
  0x2a   : > { %p740_p11 = pneg %p739_p6  ;;  %p746_p10 = por %p745_p4, %p744_p9 }
  0x2c   : > { %p747_p12 = pnand %p746_p10, %p740_p11 }
  0x2e   : > { %750 = shalt.err (!%p747_p12)
}
  0x2f   : > { %645 = dma.hbm_to_vmem [thread:$0]  (!%p972_p0), %s966_s30, 128, %s968_s4, %s134_s6  }
  0x30   : > { %p1176_p1 = scmp.lt.s32.totalorder %s867_s14, 3  ;;  %p1177_p2 = scmp.ge.s32.totalorder %s867_s14, 1 }
  0x31   : > { %s618_s3 = sshll.u32 %s959_s25, 1  ;;  %s635_s7 = sshll.u32 %s863_s13, 5 }
  0x32   : > { %p1008_p7 = pnand %p1177_p2, %p1176_p1  ;;  %s1017_s16 = scalar_lea.hbm %s1167_s1, %s635_s7 }
  0x33   : > { %s158_s18 = scalar_lea.vmem [#allocation10], %s618_s3  ;;  %s155_s30 = scalar_lea.sflag [#allocation11], %s959_s25 }
  0x34   : > { %s1178_s29 = scalar_select %p1008_p7, 1, 0 }
  0x35   : > { %s168_s19 = sshll.u32 %s158_s18, 4  ;;  %s751_s4 = scalar_lea.hbm %s1017_s16, 32  ;;  %s169_s19 = int_to_ptr.vmem [resolvable:$true] %s168_s19 }
  0x36   : > { %p752_p9 = scmp.ne.s32.totalorder %s1017_s16, %s751_s4  ;;  %s756_s26 = scalar_lea.hbm %s1167_s1, 64 }
  0x37   : > { %p757_p3 = scmp.lt.u32.totalorder %s1017_s16, %s1167_s1  ;;  %p758_p6 = scmp.lt.u32.totalorder %s756_s26, %s751_s4 }
  0x38   : > { %p754_p11 = pnand %p752_p9, %p723_p5  ;;  %p760_p10 = scmp.lt.u32.totalorder %s751_s4, %s1017_s16 }
  0x39   : > { %p759_p4 = por %p758_p6, %p757_p3 }
  0x3a   : > { %p755_p13 = pneg %p754_p11 }
  0x3b   : > { %p761_p12 = por %p760_p10, %p759_p4 }
  0x3d   : > { %p762_p1 = pnand %p761_p12, %p755_p13 }
  0x3f   : > { %765 = shalt.err (!%p762_p1)
}
  0x40   : > { %s766_s25 = scalar_lea.vmem %s169_s19, 32  ;;  %s870_s3 = smov [#allocation10]  }
  0x41   : > { %p767_p2 = scmp.ne.s32.totalorder %s169_s19, %s766_s25  ;;  %s771_s7 = sshll.u32 %s870_s3, 4  ;;  %s772_s7 = int_to_ptr.vmem [resolvable:$false] %s771_s7 }
  0x42   : > { %s773_s8 = scalar_lea.vmem %s772_s7, 64  ;;  %p774_p8 = scmp.lt.s32.totalorder %s169_s19, %s772_s7 }
  0x43   : > { %p769_p9 = pnand %p767_p2, %p723_p5  ;;  %p775_p7 = scmp.lt.s32.totalorder %s773_s8, %s766_s25 }
  0x45   : > { %p770_p11 = pneg %p769_p9  ;;  %p776_p3 = por %p775_p7, %p774_p8 }
  0x47   : > { %p777_p6 = pnand %p776_p3, %p770_p11 }
  0x49   : > { %780 = shalt.err (!%p777_p6)
}
  0x4a   : > { %648 = dma.hbm_to_vmem [thread:$0]  (!%p972_p0), %s1017_s16, 32, %s169_s19, %s155_s30  }
  0x4b   : > { %p1179_p13 = scmp.ne.s32.totalorder %s1178_s29, 0 }
  0x4c   : > { %s1042_s15 = sand.u32 (!%p1179_p13), 1, %s851_s10   ;;  %p1180_p5 = scmp.ne.s32.totalorder (!%p1179_p13), %s1172_s21, 0 }
  0x4d   : > { %177 = sbr.rel (%p1179_p13) target bundleno = 464 (0x1d0), region = 28  ;;  %s622_s18 = sshll.u32 (!%p1179_p13), %s1042_s15, 3 }
  0x4e   : > { %s180_s4 = scalar_lea.sflag (!%p1179_p13), [#allocation8], %s1042_s15  ;;  %s183_s6 = scalar_lea.vmem (!%p1179_p13), [#allocation7], %s622_s18 }
  0x54   : > { %834 = dma.done.wait (%p1180_p5), %s180_s4, 128  }
  0x55   : > { %836 = vsyncadd (%p1180_p5), %s180_s4, 4294967168  ;;  %s623_s5 = sshll.u32 %s1042_s15, 1  ;;  %s189_s29 = scalar_lea.sflag [#allocation11], %s1042_s15 }
  0x56   : > { %s1052_s16 = scalar_lea.vmem [#allocation10], %s623_s5 }
  0x57   : > { %838 = dma.done.wait (%p1180_p5), %s189_s29, 32  }
  0x58   : > { %840 = vsyncadd (%p1180_p5), %s189_s29, 4294967264  ;;  %vm422_vm0 = vcmask 3072   ;;  %v871_v0 = vmov 0.0   ;;  %vm238_vm1 = vcmask 1043456   ;;  %v220_v1 = vld [vmem:[%s183_s6] sm:$0xff]  ;;  %v286_v17 = vlaneseq  ;;  %s874_s21 = smov 1  }
  0x59   : > { %424 = vst.msk [vmem:[#allocation3] sm:$0xf] %vm422_vm0, %v871_v0  ;;  %423 = vst.msk [vmem:[#allocation2] sm:$0xf] %vm422_vm0, %v871_v0  ;;  %v236_v2 = vcombine.high %v220_v1, %v220_v1  ;;  %v239_v3 = vsel %vm238_vm1, %v220_v1, -inf  ;;  %v873_v58 = vmov 1.0  }
  0x5a   : > { %425 = vst.msk [vmem:[#allocation4] sm:$0xf] %vm422_vm0, %v871_v0  ;;  %v240_v4 = vrot.slane %v239_v3, 4  ;;  %v1072_v20 = vshrl.u32 %v286_v17, 7  ;;  %v221_v24 = vld [vmem:[%s1052_s16] sm:$0x3]  ;;  %v333_v59 = vcombine.low %v873_v58, %v873_v58 }
  0x5b   : > { %v246_v5 = vsel %vm238_vm1, %v236_v2, -inf  ;;  %v872_v50 = vmov 1966171168   ;;  %vm328_vm4 = vcmp.ne.s32.totalorder %v221_v24, 4294967295  ;;  %vm407_vm5 = vcmask 1040384   ;;  %s875_s19 = smov 2  }
  0x5c   : > { %v241_v6 = vmax.f32 %v239_v3, %v240_v4  ;;  %v247_v7 = vrot.slane %v246_v5, 4  ;;  %v290_v22 = vsub.s32 0, %v1072_v20  ;;  %v294_v23 = vsub.s32 1, %v1072_v20  ;;  %s876_s30 = smov 3   ;;  %s877_s20 = smov 4  }
  0x5d   : > { %v335_v51 = vunpack.c.l.s4 %v872_v50  ;;  %vm426_vm6 = vcmask 0   ;;  %s624_s26 = sshll.u32 %s1042_s15, 2  ;;  %vm478_vm7 = vcmask 7168   ;;  %vm480_vm8 = vcmask 15360   ;;  %s631_s27 = sshll.u32 %s859_s12, 6 }
  0x5e   : > { %v242_v8 = vrot.slane %v241_v6, 2  ;;  %v248_v9 = vmax.f32 %v246_v5, %v247_v7  ;;  %v291_v25 = vrot.slane %v221_v24, %v290_v22  ;;  %v295_v26 = vrot.slane %v221_v24, %v294_v23  ;;  %427 = vst.msk [vmem:[#allocation5] sm:$0x1] %vm426_vm6, %v871_v0  ;;  %428 = vst.msk [vmem:[#allocation6] sm:$0x1] %vm426_vm6, %v871_v0  ;;  %s217_s28 = scalar_lea.vmem [#allocation12], %s624_s26  ;;  %s1117_s8 = scalar_lea.hbm %s1168_s2, %s631_s27 }
  0x5f   : > { %v336_v54 = vunpack.c.0.s8 %v335_v51  ;;  %vm482_vm9 = vcmask 23552   ;;  %vm484_vm10 = vcmask 31744   ;;  %s504_s25 = sshll.u32 %s217_s28, 4  ;;  %vm486_vm11 = vcmask 39936   ;;  %s491_s12 = scalar_lea.sflag [#allocation9], %s1042_s15  ;;  %s1119_s25 = int_to_ptr.vmem [resolvable:$true] %s504_s25 }
  0x60   : > { %v243_v10 = vmax.f32 %v241_v6, %v242_v8  ;;  %v249_v11 = vrot.slane %v248_v9, 2  ;;  %vm296_vm2 = vcmp.eq.s32.totalorder %v291_v25, %v1072_v20  ;;  %vm297_vm3 = vcmp.eq.s32.totalorder %v295_v26, %v1072_v20  ;;  %s781_s18 = scalar_lea.vmem %s1119_s25, 64  ;;  %p1181_p0 = scmp.ne.s32.totalorder %s1173_s22, 0 }
  0x61   : > { %v625_v30 = vsel %vm296_vm2, 1.0, %v871_v0  ;;  %v626_v31 = vsel %vm297_vm3, 1.0, %v871_v0  ;;  %v339_v60 = vsub.s32 %v336_v54, %v1072_v20  ;;  %vm488_vm12 = vcmask 60416   ;;  %p782_p8 = scmp.ne.s32.totalorder %s1119_s25, %s781_s18  ;;  %s878_s4 = smov [#allocation12]  }
  0x62   : > { %v244_v12 = vrot.slane %v243_v10, 1  ;;  %v250_v13 = vmax.f32 %v248_v9, %v249_v11  ;;  %v304_v36 = vcombine.low %v625_v30, %v626_v31  ;;  %v324_v11 = vsel %vm238_vm1, %v626_v31, 0.0  ;;  %s785_s6 = sshll.u32 %s878_s4, 4  ;;  %s786_s6 = int_to_ptr.vmem [resolvable:$false] %s785_s6 }
  0x63   : > { %v340_v3 = vrot.slane %v333_v59, %v339_v60  ;;  %p783_p7 = pnand %p782_p8, %p1181_p0  ;;  %s787_s5 = scalar_lea.vmem %s786_s6, 128 }
  0x64   : > { %v1066_v14 = vmax.f32 %v243_v10, %v244_v12  ;;  %v251_v15 = vrot.slane %v250_v13, 1  ;;  %v356_v41 = vmul.f32 %v304_v36, %v220_v1  ;;  %v323_v10 = vsel %vm238_vm1, %v625_v30, 0.0  ;;  %p788_p10 = scmp.lt.s32.totalorder %s1119_s25, %s786_s6  ;;  %p789_p12 = scmp.lt.s32.totalorder %s787_s5, %s781_s18 }
  0x65   : > { %v627_v12 = vsel %vm328_vm4, 1.0, %v871_v0  ;;  %p784_p4 = pneg %p783_p7 }
  0x66   : > { %v1068_v16 = vmax.f32 %v250_v13, %v251_v15  ;;  %v358_v46 = vcombine.high %v356_v41, %v356_v41  ;;  %v360_v48 = vsel %vm238_vm1, %v356_v41, 0.0  ;;  %p790_p1 = por %p789_p12, %p788_p10 }
  0x67   : > { %v361_v52 = vrot.slane %v360_v48, 4 }
  0x68   : > { %v255_v18 = vcombine.low %v1066_v14, %v1068_v16  ;;  %v367_v49 = vsel %vm238_vm1, %v358_v46, 0.0  ;;  %p791_p2 = pnand %p790_p1, %p784_p4 }
  0x69   : > { %v368_v53 = vrot.slane %v367_v49, 4  ;;  %v362_v55 = vadd.f32 %v361_v52, %v360_v48 }
  0x6a   : > { %v257_v19 = vsub.f32 %v220_v1, %v255_v18 }
  0x6b   : > { %v369_v56 = vadd.f32 %v368_v53, %v367_v49  ;;  %v363_v62 = vrot.slane %v362_v55, 2 }
  0x6c   : > { %v258_v21 = vmul.f32 1.442695, %v257_v19  ;;  %v347_v19 = vrot.slane %v340_v3, %v339_v60 }
  0x6d   : > { %v370_v1 = vrot.slane %v369_v56, 2  ;;  %v364_v4 = vadd.f32 %v363_v62, %v362_v55 }
  0x6e   : > { %711 = vpow2.f32 %v258_v21 }
  0x6f   : > { %v371_v9 = vadd.f32 %v370_v1, %v369_v56  ;;  %v365_v26 = vrot.slane %v364_v4, 1  ;;  %v436_v1 = vld [vmem:[#allocation4] sm:$0xf] }
  0x78   : > { %v712_v27 = vpop.eup %711 }
  0x79   : > { %v261_v28 = vcombine.high %v712_v27, %v712_v27  ;;  %v263_v29 = vsel %vm238_vm1, %v712_v27, 0.0 }
  0x7a   : > { %v264_v32 = vrot.slane %v263_v29, 4 }
  0x7b   : > { %v270_v33 = vsel %vm238_vm1, %v261_v28, 0.0  ;;  %v372_v28 = vrot.slane %v371_v9, 1 }
  0x7c   : > { %v265_v34 = vadd.f32 %v264_v32, %v263_v29  ;;  %v271_v35 = vrot.slane %v270_v33, 4  ;;  %v325_v29 = vadd.f32 %v324_v11, %v323_v10  ;;  %v443_v11 = vld [vmem:[#allocation6] sm:$0x1] }
  0x7e   : > { %v266_v37 = vrot.slane %v265_v34, 2  ;;  %v272_v38 = vadd.f32 %v271_v35, %v270_v33  ;;  %v349_v33 = vmul.f32 %v627_v12, %v347_v19  ;;  %v366_v35 = vadd.f32 %v365_v26, %v364_v4  ;;  %v429_v4 = vld [vmem:[#allocation2] sm:$0xf] }
  0x80   : > { %v267_v39 = vadd.f32 %v266_v37, %v265_v34  ;;  %v273_v40 = vrot.slane %v272_v38, 2 }
  0x82   : > { %v268_v42 = vrot.slane %v267_v39, 1  ;;  %v274_v43 = vadd.f32 %v273_v40, %v272_v38  ;;  %v373_v38 = vadd.f32 %v372_v28, %v371_v9 }
  0x84   : > { %v269_v44 = vadd.f32 %v268_v42, %v267_v39  ;;  %v275_v45 = vrot.slane %v274_v43, 1 }
  0x86   : > { %v276_v47 = vadd.f32 %v275_v45, %v274_v43  ;;  %713 = vrcp.f32 %v269_v44 }
  0x88   : > { %715 = vrcp.f32 %v276_v47 }
  0x89   : > { %717 = vlog2.f32 %v269_v44  ;;  %v380_v44 = vrot.slane %v349_v33, %v290_v22 }
  0x8a   : > { %719 = vlog2.f32 %v276_v47 }
  0x8b   : > { %v413_v59 = vsel %vm407_vm5, %v380_v44, 0.0 }
  0x90   : > { %v714_v57 = vpop.eup %713 }
  0x92   : > { %v716_v61 = vpop.eup %715 }
  0x93   : > { %v283_v63 = vcombine.low %v714_v57, %v716_v61  ;;  %v718_v5 = vpop.eup %717 }
  0x94   : > { %v720_v13 = vpop.eup %719  ;;  %v351_v25 = vmul.f32 0.6931472, %v718_v5 }
  0x95   : > { %v285_v2 = vmul.f32 %v712_v27, %v283_v63  ;;  %v353_v30 = vmul.f32 0.6931472, %v720_v13 }
  0x96   : > { %v354_v34 = vadd.f32 %v351_v25, %v1066_v14  ;;  %v384_v14 = vrot.slane %v349_v33, %v294_v23  ;;  %v433_v23 = vld [vmem:[#allocation3] sm:$0xf] }
  0x97   : > { %v316_v6 = vcombine.high %v285_v2, %v285_v2  ;;  %v318_v7 = vsel %vm238_vm1, %v285_v2, 0.0  ;;  %v306_v8 = vmul.f32 %v304_v36, %v285_v2  ;;  %v355_v39 = vadd.f32 %v353_v30, %v1068_v16 }
  0x98   : > { %v374_v43 = vsub.f32 %v354_v34, %v366_v35  ;;  %v414_v60 = vsel %vm407_vm5, %v384_v14, 0.0 }
  0x99   : > { %v319_v15 = vsel %vm238_vm1, %v316_v6, 0.0  ;;  %v308_v17 = vcombine.high %v306_v8, %v306_v8  ;;  %v310_v18 = vsel %vm238_vm1, %v306_v8, 0.0  ;;  %v375_v47 = vsub.f32 %v355_v39, %v373_v38  ;;  %v439_v8 = vld [vmem:[#allocation5] sm:$0x1] }
  0x9a   : > { %v320_v21 = vadd.f32 %v319_v15, %v318_v7  ;;  %v389_v24 = vrot.slane %v310_v18, 4  ;;  %v387_v50 = vmul.f32 %v380_v44, %v374_v43  ;;  %v415_v20 = vadd.f32 %v414_v60, %v413_v59 }
  0x9b   : > { %v311_v27 = vsel %vm238_vm1, %v308_v17, 0.0  ;;  %v388_v16 = vmul.f32 %v384_v14, %v375_v47 }
  0x9c   : > { %321 = vadd.xlane.f32.xlu0 %v320_v21  ;;  %v390_v31 = vadd.f32 %v389_v24, %v310_v18  ;;  %v395_v32 = vrot.slane %v311_v27, 4  ;;  %v312_v42 = vadd.f32 %v311_v27, %v310_v18 }
  0x9e   : > { %v391_v36 = vrot.slane %v390_v31, 2  ;;  %v396_v37 = vadd.f32 %v395_v32, %v311_v27 }
  0xa0   : > { %326 = vadd.xlane.f32.xlu0 %v325_v29  ;;  %v392_v40 = vadd.f32 %v391_v36, %v390_v31  ;;  %v397_v41 = vrot.slane %v396_v37, 2 }
  0xa2   : > { %v393_v45 = vrot.slane %v392_v40, 1  ;;  %v398_v46 = vadd.f32 %v397_v41, %v396_v37 }
  0xa4   : > { %v394_v48 = vadd.f32 %v393_v45, %v392_v40  ;;  %v399_v49 = vrot.slane %v398_v46, 1  ;;  %313 = vadd.xlane.f32.xlu0 %v312_v42 }
  0xa6   : > { %v400_v51 = vadd.f32 %v399_v49, %v398_v46  ;;  %v401_v52 = vsub.f32 1.0, %v394_v48 }
  0xa8   : > { %v402_v53 = vsub.f32 1.0, %v400_v51  ;;  %v403_v54 = vmul.f32 %v401_v52, %v401_v52 }
  0xaa   : > { %v404_v55 = vmul.f32 %v402_v53, %v402_v53  ;;  %v405_v56 = vmul.f32 %v403_v54, %v387_v50 }
  0xac   : > { %v406_v57 = vmul.f32 %v404_v55, %v388_v16  ;;  %v408_v22 = vsel %vm407_vm5, %v405_v56, 0.0 }
  0xae   : > { %v409_v58 = vsel %vm407_vm5, %v406_v57, 0.0 }
  0xaf   : > { %v410_v61 = vadd.f32 %v409_v58, %v408_v22 }
  0xb1   : > { %411 = vadd.xlane.f32.xlu1 %v410_v61 }
  0xb5   : > { %416 = vadd.xlane.f32.xlu1 %v415_v20 }
 0x129   : > { %v322_v62 = vpop.xlane.xlu0 %321 }
 0x12a   : > { %v434_v63 = vadd.f32 %v433_v23, %v322_v62 }
 0x12c   : > { %435 = vst.msk [vmem:[#allocation3] sm:$0xf] %vm422_vm0, %v434_v63 }
 0x12d   : > { %v327_v2 = vpop.xlane.xlu0 %326 }
 0x12e   : > { %v437_v3 = vadd.f32 %v436_v1, %v327_v2 }
 0x130   : > { %438 = vst.msk [vmem:[#allocation4] sm:$0xf] %vm422_vm0, %v437_v3 }
 0x131   : > { %v314_v5 = vpop.xlane.xlu0 %313 }
 0x132   : > { %v430_v6 = vadd.f32 %v429_v4, %v314_v5 }
 0x133   : > { %v450_v7 = vld [vmem:[#allocation3] sm:$0xf] }
 0x134   : > { %465 = vrot.lane.b32.xlu1 %v450_v7, %s874_s21  ;;  %432 = vst.msk [vmem:[#allocation2] sm:$0xf] %vm422_vm0, %v430_v6 }
 0x137   : > { %v451_v0 = vld [vmem:[#allocation4] sm:$0xf] }
 0x138   : > { %469 = vrot.lane.b32.xlu0 %v451_v0, %s875_s19 }
 0x13b   : > { %v449_v19 = vld [vmem:[#allocation2] sm:$0xf] }
 0x13e   : > { %v412_v9 = vpop.xlane.xlu1 %411 }
 0x13f   : > { %v440_v10 = vadd.f32 %v439_v8, %v412_v9 }
 0x141   : > { %442 = vst.msk [vmem:[#allocation5] sm:$0x1] %vm426_vm6, %v440_v10 }
 0x142   : > { %v417_v12 = vpop.xlane.xlu1 %416 }
 0x143   : > { %v444_v13 = vadd.f32 %v443_v11, %v417_v12 }
 0x145   : > { %445 = vst.msk [vmem:[#allocation6] sm:$0x1] %vm426_vm6, %v444_v13 }
 0x148   : > { %v628_v15 = vld [vmem:[#allocation5] ss:$0 sm:$0xff] }
 0x149   : > { %472 = vrot.lane.b32.xlu1 %v628_v15, %s876_s30 }
 0x14c   : > { %v629_v17 = vld [vmem:[#allocation6] ss:$0 sm:$0xff] }
 0x14d   : > { %475 = vrot.lane.b32.xlu1 %v629_v17, %s877_s20 }
 0x1a6   : > { %v466_v18 = vpop.permute.xlu1 %465 }
 0x1a7   : > { %v479_v21 = vsel %vm478_vm7, %v449_v19, %v466_v18 }
 0x1aa   : > { %v470_v24 = vpop.permute.xlu0 %469 }
 0x1ab   : > { %v481_v26 = vsel %vm480_vm8, %v479_v21, %v470_v24 }
 0x1bb   : > { %v473_v25 = vpop.permute.xlu1 %472 }
 0x1bc   : > { %v483_v27 = vsel %vm482_vm9, %v481_v26, %v473_v25 }
 0x1bf   : > { %v476_v28 = vpop.permute.xlu1 %475 }
 0x1c0   : > { %v485_v29 = vsel %vm484_vm10, %v483_v27, %v476_v28 }
 0x1c1   : > { %v487_v30 = vsel %vm486_vm11, %v485_v29, 0.0 }
 0x1c2   : > { %489 = vst.msk [vmem:[%s217_s28] sm:$0xf] %vm488_vm12, %v487_v30 }
 0x1c3   : > { %794 = shalt.err (!%p791_p2)
}
 0x1c4   : > { %s795_s15 = scalar_lea.hbm %s1117_s8, 64  ;;  %s799_s21 = scalar_lea.hbm %s1168_s2, 128 }
 0x1c5   : > { %p796_p9 = scmp.ne.s32.totalorder %s1117_s8, %s795_s15  ;;  %p800_p6 = scmp.lt.u32.totalorder %s1117_s8, %s1168_s2 }
 0x1c6   : > { %p801_p13 = scmp.lt.u32.totalorder %s799_s21, %s795_s15  ;;  %p803_p8 = scmp.lt.u32.totalorder %s795_s15, %s1117_s8 }
 0x1c7   : > { %p797_p11 = pnand %p796_p9, %p1181_p0 }
 0x1c8   : > { %p802_p5 = por %p801_p13, %p800_p6 }
 0x1c9   : > { %p798_p3 = pneg %p797_p11 }
 0x1ca   : > { %p804_p7 = por %p803_p8, %p802_p5 }
 0x1cc   : > { %p805_p4 = pnand %p804_p7, %p798_p3 }
 0x1ce   : > { %808 = shalt.err (!%p805_p4)
}
 0x1cf   : > { %640 = dma.vmem_to_hbm [thread:$0]  (%p1181_p0), %s1119_s25, 64, %s1117_s8, %s491_s12  }
 0x1d0 PF: > { %s516_s20 = sand.u32 1, %s847_s9   ;;  %p1182_p10 = scmp.ne.s32.totalorder %s1174_s24, 0 }
 0x1d1   : > { %p1183_p12 = scmp.ge.s32.totalorder %s867_s14, 2  ;;  %s517_s26 = scalar_lea.sflag [#allocation9], %s516_s20 }
 0x1d3   : > { %p650_p1 = pnand %p1183_p12, %p1182_p10 }
 0x1d5   : > { %842 = dma.done.wait (!%p650_p1), %s517_s26, 64  }
 0x1d6   : > { %844 = vsyncadd (!%p650_p1), %s517_s26, 4294967232  ;;  %s21_s14 = sadd.s32 1, %s867_s14   ;;  %s1184_s9 = smov %s851_s10 }
 0x1d7   : > { %p18_p2 = scmp.ge.s32.totalorder %s21_s14, 4   ;;  %s1185_s10 = smov %s855_s11 }
 0x1d8   : > { %s1186_s11 = smov %s950_s23  ;;  %s1187_s12 = smov %s863_s13 }
 0x1d9   : > { %s1188_s13 = smov %s1190_s17  ;;  %20 = sbr.rel (!%p18_p2) target bundleno = 8 (0x8), region = 94 }
 0x1e0   :  { %522 = vsyncpa [#allocation8], 1 }
 0x1e1   :  { %524 = vsyncpa [#allocation8 + $0x1], 1 }
 0x1e2   :  { %525 = vsyncpa [#allocation11], 1 }
 0x1e3   :  { %527 = vsyncpa [#allocation11 + $0x1], 1 }
 0x1e4   :  { %528 = vsyncpa [#allocation9], 1 }
 0x1e5   :  { %530 = vsyncpa [#allocation9 + $0x1], 1 }

</bundles_post_ra>
